<compile_context>
chip_gen: v5e
topology: v5e:2x2
jax: 0.10.0
libtpu: 0.0.40
codegen_flags: <defaults>
</compile_context>

<pallas_src>
import functools

import jax
import jax.numpy as jnp
from jax.experimental import pallas as pl
from jax.experimental.pallas import tpu as pltpu

OUT_PAD = 128      # lane-dense padded output width (real probs live in cols 0:4)
NUM_CLASSES = 2    # each MLP head emits 2 logits -> softmax over 2 classes


def combined_mlp_kernel(x_ref, w1_ref, b1_ref, w2_ref, b2_ref, o_ref):
    # fc1 for both heads at once: [TB, D_in] @ [D_in, 2H] -> [TB, 2H], f32 acc.
    h = jnp.dot(x_ref[...], w1_ref[...], preferred_element_type=jnp.float32)
    h = jnp.maximum(h + b1_ref[...], 0.0)

    # fc2 (block-diagonal, zero-padded to 128 output lanes):
    # [TB, 2H] @ [2H, 128] -> [TB, 128]; real logits in lanes 0:4.
    logits = jnp.dot(h.astype(jnp.bfloat16), w2_ref[...],
                     preferred_element_type=jnp.float32) + b2_ref[...]

    # Per-head masked softmax over lanes {0,1} and {2,3}; padded lanes -> 0.
    lane = jax.lax.broadcasted_iota(jnp.int32, logits.shape, dimension=1)
    mask0 = lane < NUM_CLASSES
    mask1 = (lane >= NUM_CLASSES) & (lane < 2 * NUM_CLASSES)
    neg_inf = jnp.float32(-jnp.inf)

    m0 = jnp.max(jnp.where(mask0, logits, neg_inf), axis=-1, keepdims=True)
    m1 = jnp.max(jnp.where(mask1, logits, neg_inf), axis=-1, keepdims=True)
    e0 = jnp.where(mask0, jnp.exp(logits - m0), 0.0)
    e1 = jnp.where(mask1, jnp.exp(logits - m1), 0.0)
    s0 = jnp.sum(e0, axis=-1, keepdims=True)
    s1 = jnp.sum(e1, axis=-1, keepdims=True)

    o_ref[...] = (e0 / s0 + e1 / s1).astype(o_ref.dtype)


def _round_up(n, m):
    return ((n + m - 1) // m) * m


@functools.partial(jax.jit, static_argnames=("tile_b",))
def combined_forward(x, w1c, b1c, w2c, b2c, *, tile_b=512):
    """x: [B, D_in]; packed params from pack_params(). Returns [2B, 2] like torch.cat."""
    B, d_in = x.shape
    tb = min(tile_b, _round_up(B, 8))
    n_tiles = pl.cdiv(B, tb)
    b_pad = n_tiles * tb

    xb = x.astype(jnp.bfloat16)
    if b_pad != B:
        xb = jnp.pad(xb, ((0, b_pad - B), (0, 0)))

    out = pl.pallas_call(
        combined_mlp_kernel,
        out_shape=jax.ShapeDtypeStruct((b_pad, OUT_PAD), jnp.float32),
        grid=(n_tiles,),
        in_specs=[
            pl.BlockSpec((tb, d_in), lambda i: (i, 0)),    # x: streamed per batch tile
            pl.BlockSpec(w1c.shape, lambda i: (0, 0)),     # weights/biases: VMEM-resident
            pl.BlockSpec(b1c.shape, lambda i: (0, 0)),
            pl.BlockSpec(w2c.shape, lambda i: (0, 0)),
            pl.BlockSpec(b2c.shape, lambda i: (0, 0)),
        ],
        out_specs=pl.BlockSpec((tb, OUT_PAD), lambda i: (i, 0)),
        compiler_params=pltpu.CompilerParams(
            dimension_semantics=("parallel",)),            # shard batch tiles across TCs
    )(xb, w1c, b1c, w2c, b2c)

    p1 = out[:B, 0:NUM_CLASSES]
    p2 = out[:B, NUM_CLASSES:2 * NUM_CLASSES]
    return jnp.concatenate([p1, p2], axis=0)               # torch.cat((p1, p2), 0)


def init_mlp_params(key, input_dim, hidden_dim, output_dim):
    # Mimics nn.Linear default init: U(-1/sqrt(fan_in), 1/sqrt(fan_in)).
    k1, k2, k3, k4 = jax.random.split(key, 4)
    lim1 = 1.0 / jnp.sqrt(jnp.float32(input_dim))
    lim2 = 1.0 / jnp.sqrt(jnp.float32(hidden_dim))
    w1 = jax.random.uniform(k1, (input_dim, hidden_dim), jnp.float32, -lim1, lim1)
    b1 = jax.random.uniform(k2, (hidden_dim,), jnp.float32, -lim1, lim1)
    w2 = jax.random.uniform(k3, (hidden_dim, output_dim), jnp.float32, -lim2, lim2)
    b2 = jax.random.uniform(k4, (output_dim,), jnp.float32, -lim2, lim2)
    return w1, b1, w2, b2


def pack_params(mlp1, mlp2):
    """Pack the two MLP heads into the fused / lane-padded layout the kernel uses."""
    w1a, b1a, w2a, b2a = mlp1
    w1b, b1b, w2b, b2b = mlp2
    _, h = w1a.shape
    # fc1: stack hidden units of both heads along the lane axis -> [D_in, 2H] (=128).
    w1c = jnp.concatenate([w1a, w1b], axis=1)
    b1c = jnp.concatenate([b1a, b1b])[None, :]
    # fc2: block diagonal, zero-padded to OUT_PAD lanes (real logits in cols 0:4).
    w2c = jnp.zeros((2 * h, OUT_PAD), jnp.float32)
    w2c = w2c.at[:h, 0:NUM_CLASSES].set(w2a)
    w2c = w2c.at[h:, NUM_CLASSES:2 * NUM_CLASSES].set(w2b)
    b2c = jnp.zeros((1, OUT_PAD), jnp.float32)
    b2c = b2c.at[0, 0:NUM_CLASSES].set(b2a)
    b2c = b2c.at[0, NUM_CLASSES:2 * NUM_CLASSES].set(b2b)
    # bf16 weights for the MXU (accumulation stays f32 inside the kernel).
    return (w1c.astype(jnp.bfloat16), b1c,
            w2c.astype(jnp.bfloat16), b2c)


def reference_forward(x, mlp1, mlp2):
    # Pure-JAX reference mirroring the kernel's bf16 casts for a tight comparison.
    def mlp(xf, params):
        w1, b1, w2, b2 = params
        f32 = lambda a: a.astype(jnp.bfloat16).astype(jnp.float32)
        h = jnp.maximum(f32(xf) @ f32(w1) + b1, 0.0)
        logits = f32(h) @ f32(w2) + b2
        return jax.nn.softmax(logits, axis=-1)
    return jnp.concatenate([mlp(x, mlp1), mlp(x, mlp2)], axis=0)


if __name__ == "__main__":
    # Small shapes consistent with the module: batch=8, input_dim=16, hidden_dim=64;
    # CombinedModel's heads each emit 2 logits -> softmax -> concat along batch.
    batch, input_dim, hidden_dim = 8, 16, 64

    key = jax.random.PRNGKey(0)
    kx, k1, k2 = jax.random.split(key, 3)
    x = jax.random.normal(kx, (batch, input_dim), jnp.float32)
    mlp1 = init_mlp_params(k1, input_dim, hidden_dim, NUM_CLASSES)
    mlp2 = init_mlp_params(k2, input_dim, hidden_dim, NUM_CLASSES)
    w1c, b1c, w2c, b2c = pack_params(mlp1, mlp2)

    out = combined_forward(x, w1c, b1c, w2c, b2c)
    out = jax.block_until_ready(out)

    ref = reference_forward(x, mlp1, mlp2)
    assert out.shape == (2 * batch, NUM_CLASSES), out.shape
    assert jnp.allclose(out, ref, atol=1e-4, rtol=1e-4), (
        float(jnp.max(jnp.abs(out - ref))))
    # Each softmax row sums to 1 (sanity check on the masked in-kernel softmax).
    assert jnp.allclose(out.sum(axis=-1), 1.0, atol=1e-5)

    print("KERNEL_OK")
</pallas_src>

<mosaic_0001>
module attributes {stable_mosaic.version = 11 : i64} {
  func.func @combined_mlp_kernel(%arg0: i32, %arg1: memref<8x16xbf16, #tpu.memory_space<vmem>>, %arg2: memref<16x128xbf16, #tpu.memory_space<vmem>>, %arg3: memref<1x128xf32, #tpu.memory_space<vmem>>, %arg4: memref<128x128xbf16, #tpu.memory_space<vmem>>, %arg5: memref<1x128xf32, #tpu.memory_space<vmem>>, %arg6: memref<8x128xf32, #tpu.memory_space<vmem>>) attributes {dimension_semantics = [#tpu.dimension_semantics<parallel>], iteration_bounds = array<i64: 1>, scalar_prefetch = 0 : i64, scratch_operands = 0 : i64, tpu.core_type = #tpu.core_type<tc>, window_params = [{transform_indices = @transform_0, window_bounds = array<i64: 8, 16>}, {pipeline_mode = #tpu.pipeline_mode<synchronous>, transform_indices = @transform_1, window_bounds = array<i64: 16, 128>}, {pipeline_mode = #tpu.pipeline_mode<synchronous>, transform_indices = @transform_2, window_bounds = array<i64: 1, 128>}, {pipeline_mode = #tpu.pipeline_mode<synchronous>, transform_indices = @transform_3, window_bounds = array<i64: 128, 128>}, {pipeline_mode = #tpu.pipeline_mode<synchronous>, transform_indices = @transform_4, window_bounds = array<i64: 1, 128>}, {transform_indices = @transform_5, window_bounds = array<i64: 8, 128>}]} {
    %c0 = arith.constant 0 : index
    %c0_0 = arith.constant 0 : index
    %0 = vector.load %arg1[%c0, %c0_0] : memref<8x16xbf16, #tpu.memory_space<vmem>>, vector<8x16xbf16>
    %c0_1 = arith.constant 0 : index
    %c0_2 = arith.constant 0 : index
    %1 = vector.load %arg2[%c0_1, %c0_2] : memref<16x128xbf16, #tpu.memory_space<vmem>>, vector<16x128xbf16>
    %cst = arith.constant dense<0.000000e+00> : vector<8x128xf32>
    %2 = tpu.matmul %0, %1, %cst {dimension_numbers = #tpu.dot_dimension_numbers<[1], [0], [0], [1], [0, 0, 1, 1], [], []>} : vector<8x16xbf16>, vector<16x128xbf16>, vector<8x128xf32> -> vector<8x128xf32>
    %c0_3 = arith.constant 0 : index
    %c0_4 = arith.constant 0 : index
    %3 = vector.load %arg3[%c0_3, %c0_4] : memref<1x128xf32, #tpu.memory_space<vmem>>, vector<1x128xf32>
    %4 = vector.broadcast %3 : vector<1x128xf32> to vector<8x128xf32>
    %5 = arith.addf %2, %4 : vector<8x128xf32>
    %cst_5 = arith.constant 0.000000e+00 : f32
    %6 = vector.broadcast %cst_5 : f32 to vector<8x128xf32>
    %7 = arith.maximumf %5, %6 : vector<8x128xf32>
    %8 = arith.truncf %7 : vector<8x128xf32> to vector<8x128xbf16>
    %c0_6 = arith.constant 0 : index
    %c0_7 = arith.constant 0 : index
    %9 = vector.load %arg4[%c0_6, %c0_7] : memref<128x128xbf16, #tpu.memory_space<vmem>>, vector<128x128xbf16>
    %cst_8 = arith.constant dense<0.000000e+00> : vector<8x128xf32>
    %10 = tpu.matmul %8, %9, %cst_8 {dimension_numbers = #tpu.dot_dimension_numbers<[1], [0], [0], [1], [0, 0, 1, 1], [], []>} : vector<8x128xbf16>, vector<128x128xbf16>, vector<8x128xf32> -> vector<8x128xf32>
    %c0_9 = arith.constant 0 : index
    %c0_10 = arith.constant 0 : index
    %11 = vector.load %arg5[%c0_9, %c0_10] : memref<1x128xf32, #tpu.memory_space<vmem>>, vector<1x128xf32>
    %12 = vector.broadcast %11 : vector<1x128xf32> to vector<8x128xf32>
    %13 = arith.addf %10, %12 : vector<8x128xf32>
    %14 = tpu.iota {dimensions = array<i32: 1>} : vector<8x128xi32>
    %c2_i32 = arith.constant 2 : i32
    %15 = vector.broadcast %c2_i32 : i32 to vector<8x128xi32>
    %16 = arith.cmpi slt, %14, %15 : vector<8x128xi32>
    %c2_i32_11 = arith.constant 2 : i32
    %17 = vector.broadcast %c2_i32_11 : i32 to vector<8x128xi32>
    %18 = arith.cmpi sge, %14, %17 : vector<8x128xi32>
    %c4_i32 = arith.constant 4 : i32
    %19 = vector.broadcast %c4_i32 : i32 to vector<8x128xi32>
    %20 = arith.cmpi slt, %14, %19 : vector<8x128xi32>
    %21 = arith.andi %18, %20 : vector<8x128xi1>
    %cst_12 = arith.constant 0xFF800000 : f32
    %22 = vector.broadcast %cst_12 : f32 to vector<8x128xf32>
    %23 = arith.select %16, %13, %22 : vector<8x128xi1>, vector<8x128xf32>
    %cst_13 = arith.constant dense<0xFF800000> : vector<8xf32>
    %24 = vector.multi_reduction <maximumf>, %23, %cst_13 [1] : vector<8x128xf32> to vector<8xf32>
    %25 = vector.shape_cast %24 : vector<8xf32> to vector<8x1xf32>
    %cst_14 = arith.constant 0xFF800000 : f32
    %26 = vector.broadcast %cst_14 : f32 to vector<8x128xf32>
    %27 = arith.select %21, %13, %26 : vector<8x128xi1>, vector<8x128xf32>
    %cst_15 = arith.constant dense<0xFF800000> : vector<8xf32>
    %28 = vector.multi_reduction <maximumf>, %27, %cst_15 [1] : vector<8x128xf32> to vector<8xf32>
    %29 = vector.shape_cast %28 : vector<8xf32> to vector<8x1xf32>
    %30 = vector.broadcast %25 : vector<8x1xf32> to vector<8x128xf32>
    %31 = arith.subf %13, %30 : vector<8x128xf32>
    %32 = math.exp %31 : vector<8x128xf32>
    %cst_16 = arith.constant 0.000000e+00 : f32
    %33 = vector.broadcast %cst_16 : f32 to vector<8x128xf32>
    %34 = arith.select %16, %32, %33 : vector<8x128xi1>, vector<8x128xf32>
    %35 = vector.broadcast %29 : vector<8x1xf32> to vector<8x128xf32>
    %36 = arith.subf %13, %35 : vector<8x128xf32>
    %37 = math.exp %36 : vector<8x128xf32>
    %cst_17 = arith.constant 0.000000e+00 : f32
    %38 = vector.broadcast %cst_17 : f32 to vector<8x128xf32>
    %39 = arith.select %21, %37, %38 : vector<8x128xi1>, vector<8x128xf32>
    %cst_18 = arith.constant dense<0.000000e+00> : vector<8xf32>
    %40 = vector.multi_reduction <add>, %34, %cst_18 [1] : vector<8x128xf32> to vector<8xf32>
    %41 = vector.shape_cast %40 : vector<8xf32> to vector<8x1xf32>
    %cst_19 = arith.constant dense<0.000000e+00> : vector<8xf32>
    %42 = vector.multi_reduction <add>, %39, %cst_19 [1] : vector<8x128xf32> to vector<8xf32>
    %43 = vector.shape_cast %42 : vector<8xf32> to vector<8x1xf32>
    %44 = vector.broadcast %41 : vector<8x1xf32> to vector<8x128xf32>
    %45 = arith.divf %34, %44 : vector<8x128xf32>
    %46 = vector.broadcast %43 : vector<8x1xf32> to vector<8x128xf32>
    %47 = arith.divf %39, %46 : vector<8x128xf32>
    %48 = arith.addf %45, %47 : vector<8x128xf32>
    %c0_20 = arith.constant 0 : index
    %c0_21 = arith.constant 0 : index
    %49 = vector.load %arg6[%c0_20, %c0_21] : memref<8x128xf32, #tpu.memory_space<vmem>>, vector<8x128xf32>
    tpu.vector_store %arg6[%c0_20, %c0_21], %48 {strides = array<i32>} : memref<8x128xf32, #tpu.memory_space<vmem>>, vector<8x128xf32>,
    return
  }
  func.func @transform_0(%arg0: i32) -> (i32, i32) {
    %c0_i32 = arith.constant 0 : i32
    %c0_i32_0 = arith.constant 0 : i32
    return %arg0, %c0_i32 : i32, i32
  }
  func.func @transform_1(%arg0: i32) -> (i32, i32) {
    %c0_i32 = arith.constant 0 : i32
    %c0_i32_0 = arith.constant 0 : i32
    %c0_i32_1 = arith.constant 0 : i32
    return %c0_i32, %c0_i32_0 : i32, i32
  }
  func.func @transform_2(%arg0: i32) -> (i32, i32) {
    %c0_i32 = arith.constant 0 : i32
    %c0_i32_0 = arith.constant 0 : i32
    %c0_i32_1 = arith.constant 0 : i32
    return %c0_i32, %c0_i32_0 : i32, i32
  }
  func.func @transform_3(%arg0: i32) -> (i32, i32) {
    %c0_i32 = arith.constant 0 : i32
    %c0_i32_0 = arith.constant 0 : i32
    %c0_i32_1 = arith.constant 0 : i32
    return %c0_i32, %c0_i32_0 : i32, i32
  }
  func.func @transform_4(%arg0: i32) -> (i32, i32) {
    %c0_i32 = arith.constant 0 : i32
    %c0_i32_0 = arith.constant 0 : i32
    %c0_i32_1 = arith.constant 0 : i32
    return %c0_i32, %c0_i32_0 : i32, i32
  }
  func.func @transform_5(%arg0: i32) -> (i32, i32) {
    %c0_i32 = arith.constant 0 : i32
    %c0_i32_0 = arith.constant 0 : i32
    return %arg0, %c0_i32 : i32, i32
  }
}

</mosaic_0001>

<bundles_post_ra>
// kernel: combined_forward.1
= control target key start
LH: loop header
LB: loop body
LE: loop exit
PB: predicated region body
PF: predicated region fallthrough
CT: control target
= control target key end

     0   :  { %10 = vsyncpa [#allocation3], 0  ;;  %s296_s21 = smov [#allocation2]   ;;  %s297_s23 = smov 64   ;;  %s349_s0 = inlined_call_operand.vmem [shape: bf16[8,16], index: 0, kind: input, shape index: {}]   ;;  %s350_s1 = inlined_call_operand.vmem [shape: bf16[16,128], index: 1, kind: input, shape index: {}]   ;;  %s351_s2 = inlined_call_operand.vmem [shape: f32[1,128], index: 2, kind: input, shape index: {}]   ;;  %s352_s3 = inlined_call_operand.hbm [shape: bf16[128,128], index: 3, kind: input, shape index: {}]   ;;  %s353_s4 = inlined_call_operand.vmem [shape: f32[1,128], index: 4, kind: input, shape index: {}]   ;;  %s354_s5 = inlined_call_operand.vmem [shape: f32[8,128], index: 5, kind: output, shape index: {}]  }
   0x1   :  { %s21_s20 = sshll.u32 %s352_s3, 4  ;;  %s23_s22 = sshll.u32 %s296_s21, 4  ;;  %s22_s20 = int_to_ptr.hbm [resolvable:$true] %s21_s20  ;;  %s24_s22 = int_to_ptr.vmem [resolvable:$true] %s23_s22 }
   0x2   :  { %s298_s24 = smov 4  }
   0x3   :  { %29 = dma.hbm_to_vmem [thread:$0]  %s22_s20, 1024, %s24_s22, [#allocation3], %s297_s23, %s297_s23, %s298_s24  }
   0x4   :  { %294 = dma.done.wait [#allocation3], 1024  }
   0x5   :  { %295 = vsyncadd [#allocation3], 4294966272  ;;  %v248_v0 = vld [vmem:[%s350_s1] sm:$0xff]  ;;  %v256_v1 = vld [vmem:[#allocation2 + $0x38] sm:$0xff]  ;;  %vm50_vm0 = vcmask 130048   ;;  %v150_v16 = vlaneseq }
   0x6   :  { %61 = vmatpush.bf16.msra.mxu0 %v248_v0  ;;  %v37_v2 = vld [vmem:[%s349_s0] sm:$0xf]  ;;  %137 = vmatpush.bf16.msra.mxu1 %v256_v1  ;;  %v255_v3 = vld [vmem:[#allocation2 + $0x30] sm:$0xff]  ;;  %v254_v4 = vld [vmem:[#allocation2 + $0x28] sm:$0xff] }
   0x7   :  { %v253_v5 = vld [vmem:[#allocation2 + $0x20] sm:$0xff]  ;;  %v252_v6 = vld [vmem:[#allocation2 + $0x18] sm:$0xff]  ;;  %v251_v7 = vld [vmem:[#allocation2 + $0x10] sm:$0xff]  ;;  %v151_v17 = vand.u32 127, %v150_v16 }
   0x8   :  { %v250_v8 = vld [vmem:[#allocation2 + $0x8] sm:$0xff]  ;;  %v249_v9 = vld [vmem:[#allocation2] sm:$0xff] }
   0x9   :  { %215 = vmatmul.msk.bf16.vlgmr.msra.gmra.mxu0 %vm50_vm0, %v37_v2  ;;  %v260_v10 = vld [vmem:[%s351_s2] ss:$0 sm:$0xff]  ;;  %vm152_vm1 = vcmp.lt.s32.totalorder %v151_v17, 2  ;;  %vm153_vm2 = vcmp.ge.s32.totalorder %v151_v17, 2  ;;  %vm154_vm3 = vcmp.lt.s32.totalorder %v151_v17, 4 }
   0xa   :  { %138 = vmatpush.bf16.msra.mxu1 %v255_v3  ;;  %v261_v18 = vld [vmem:[%s353_s4] ss:$0 sm:$0xff]  ;;  %vm155_vm4 = vmand %vm153_vm2, %vm154_vm3 }
   0xe   :  { %139 = vmatpush.bf16.msra.mxu1 %v254_v4 }
  0x12   :  { %140 = vmatpush.bf16.msra.mxu1 %v253_v5 }
  0x16   :  { %141 = vmatpush.bf16.msra.mxu1 %v252_v6 }
  0x1a   :  { %142 = vmatpush.bf16.msra.mxu1 %v251_v7 }
  0x1e   :  { %143 = vmatpush.bf16.msra.mxu1 %v250_v8 }
  0x22   :  { %144 = vmatpush.bf16.msra.mxu1 %v249_v9 }
  0x86   :  { %v63_v11 = vpop.f32.mrf.mxu0 }
  0x87   :  { %v64_v12 = vadd.f32 %v260_v10, %v63_v11 }
  0x89   :  { %v67_v13 = vmax.f32 %v64_v12, 0.0 }
  0x8b   :  { %v68_v14 = vpack.c.bf16 %v67_v13, %v67_v13 }
  0x8d   :  { %145 = vmatmul.bf16.vlgmr.msra.gmra.mxu1 %v68_v14 }
  0x8e   :  { %v65_v15 = vpop.f32.mrf.mxu0 }
 0x10a   :  { %v146_v19 = vpop.f32.mrf.mxu1 }
 0x10b   :  { %v147_v20 = vadd.f32 %v261_v18, %v146_v19 }
 0x10d   :  { %v156_v21 = vsel %vm152_vm1, %v147_v20, -inf  ;;  %v159_v23 = vsel %vm155_vm4, %v147_v20, -inf }
 0x10e   :  { %157 = vmax.xlane.f32.xlu0 %v156_v21 }
 0x112   :  { %v148_v22 = vpop.f32.mrf.mxu1 }
 0x116   :  { %160 = vmax.xlane.f32.xlu0 %v159_v23 }
 0x181   :  { %v158_v24 = vpop.xlane.xlu0 %157 }
 0x182   :  { %v162_v25 = vsub.f32 %v147_v20, %v158_v24 }
 0x184   :  { %v163_v26 = vmul.f32 1.442695, %v162_v25 }
 0x186   :  { %262 = vpow2.f32 %v163_v26 }
 0x189   :  { %v161_v27 = vpop.xlane.xlu0 %160 }
 0x18a   :  { %v166_v28 = vsub.f32 %v147_v20, %v161_v27 }
 0x18c   :  { %v263_v29 = vpop.eup %262  ;;  %v167_v30 = vmul.f32 1.442695, %v166_v28 }
 0x18d   :  { %v165_v31 = vsel %vm152_vm1, %v263_v29, 0.0 }
 0x18e   :  { %264 = vpow2.f32 %v167_v30  ;;  %170 = vadd.xlane.f32.xlu1 %v165_v31 }
 0x194   :  { %v265_v32 = vpop.eup %264 }
 0x195   :  { %v169_v33 = vsel %vm155_vm4, %v265_v32, 0.0 }
 0x196   :  { %172 = vadd.xlane.f32.xlu1 %v169_v33 }
 0x201   :  { %v171_v34 = vpop.xlane.xlu1 %170 }
 0x202   :  { %266 = vrcp.f32 %v171_v34  ;;  %v185_v43 = vand.u32 2147483648, %v171_v34  ;;  %vm179_vm6 = vweird.f32 %v171_v34  ;;  %v183_v44 = vand.u32 2147483647, %v171_v34 }
 0x204   :  { %v186_v50 = vor.u32 1.1754944e-38, %v185_v43  ;;  %vm184_vm9 = vcmp.eq.f32.partialorder %v183_v44, 8.507059e+37 }
 0x208   :  { %v267_v35 = vpop.eup %266 }
 0x209   :  { %v175_v36 = vmul.f32 %v267_v35, %v171_v34  ;;  %v173_v37 = vpop.xlane.xlu1 %172  ;;  %vm180_vm5 = vweird.f32 %v267_v35 }
 0x20a   :  { %268 = vrcp.f32 %v173_v37  ;;  %vm181_vm7 = vmor %vm179_vm6, %vm180_vm5  ;;  %v200_v46 = vand.u32 2147483648, %v173_v37  ;;  %v198_v49 = vand.u32 2147483647, %v173_v37  ;;  %vm194_vm10 = vweird.f32 %v173_v37 }
 0x20b   :  { %v176_v38 = vsub.f32 1.0, %v175_v36 }
 0x20c   :  { %v201_v53 = vor.u32 1.1754944e-38, %v200_v46  ;;  %vm199_vm12 = vcmp.eq.f32.partialorder %v198_v49, 8.507059e+37 }
 0x20d   :  { %v177_v39 = vmul.f32 %v267_v35, %v176_v38 }
 0x20f   :  { %v178_v41 = vadd.f32 %v267_v35, %v177_v39 }
 0x210   :  { %v269_v40 = vpop.eup %268 }
 0x211   :  { %v190_v42 = vmul.f32 %v269_v40, %v173_v37  ;;  %v182_v47 = vsel %vm181_vm7, %v267_v35, %v178_v41  ;;  %vm195_vm8 = vweird.f32 %v269_v40 }
 0x212   :  { %v187_v52 = vsel %vm184_vm9, %v186_v50, %v182_v47  ;;  %vm196_vm11 = vmor %vm194_vm10, %vm195_vm8 }
 0x213   :  { %v191_v45 = vsub.f32 1.0, %v190_v42  ;;  %v188_v56 = vmul.f32 %v187_v52, %v165_v31 }
 0x215   :  { %v192_v48 = vmul.f32 %v269_v40, %v191_v45 }
 0x217   :  { %v193_v51 = vadd.f32 %v269_v40, %v192_v48 }
 0x219   :  { %v197_v54 = vsel %vm196_vm11, %v269_v40, %v193_v51 }
 0x21a   :  { %v202_v55 = vsel %vm199_vm12, %v201_v53, %v197_v54 }
 0x21b   :  { %v203_v57 = vmul.f32 %v202_v55, %v169_v33 }
 0x21d   :  { %v204_v58 = vadd.f32 %v203_v57, %v188_v56 }
 0x21f   :  { %205 = vst [vmem:[%s354_s5] sm:$0xff] %v204_v58 }
 0x220   :  { %210 = vsyncpa [#allocation3], 1 }

</bundles_post_ra>
